<compile_context>
chip_gen: v5e
topology: v5e:2x2
jax: 0.10.0
libtpu: 0.0.40
codegen_flags: <defaults>
</compile_context>

<pallas_src>
import math

import jax
import jax.numpy as jnp
from jax.experimental import pallas as pl
from jax.experimental.pallas import tpu as pltpu


# ------------------------- module hyper-parameters -------------------------
ZETA = 1.1
GAMMA = -0.1
ALPHA = 0.01
MAX_ITER = 10000

_LANES = 128
_MAX_BLOCK_ROWS = 2048   # (2048, 128) f32 = 1 MiB per block; 2 MiB double-buffered
_NUM_STRIPES = 2         # megacore sharding on v7x; sequential (and cheap) elsewhere


def _cdiv(a, b):
    return -(-a // b)


# ------------------------------ TempDecay ----------------------------------
def temp_decay(t, t_max=MAX_ITER, rel_start_decay=0.2, start_b=20.0, end_b=2.0):
    """Host-side scalar schedule (matches the PyTorch TempDecay)."""
    start_decay = rel_start_decay * t_max
    if t < start_decay:
        return 0.0
    rel_t = (t - start_decay) / (t_max - start_decay)
    return end_b + 0.5 * (start_b - end_b) * (1.0 + math.cos(rel_t * math.pi))


# ------------------------------- kernel -------------------------------------
def _make_kernel(block_rows, steps_per_stripe, valid_rows):
    """Kernel over a (block_rows, 128) tile; accumulates sum(h**beta) per stripe."""

    def kernel(beta_ref, x_ref, o_ref):
        s = pl.program_id(0)   # stripe (parallel)
        k = pl.program_id(1)   # step inside stripe (arbitrary / reduction)

        @pl.when(k == 0)
        def _init():
            o_ref[...] = jnp.zeros_like(o_ref)

        beta = beta_ref[0]                       # scalar from SMEM, beta > 0
        x = x_ref[...]                           # (block_rows, 128) f32

        # h = |rectified_sigmoid(x) - 0.5| * 2 == min((zeta-gamma)*|tanh(x/2)|, 1)
        t = jnp.tanh(x * 0.5)
        h = jnp.minimum(jnp.abs(t) * (ZETA - GAMMA), 1.0)

        # p = h ** beta  (beta > 0 guaranteed by host short-circuit; 0**beta == 0)
        logh = jnp.log(jnp.maximum(h, 1e-30))
        p = jnp.where(h > 0.0, jnp.exp(beta * logh), 0.0)

        # Mask rows outside the real array: boundary-block padding and duplicate
        # blocks produced by the clamped index map (stripe imbalance).
        logical_block = s * steps_per_stripe + k
        start_row = logical_block * block_rows
        row_ids = jax.lax.broadcasted_iota(jnp.int32, p.shape, 0)
        p = jnp.where(start_row + row_ids < valid_rows, p, 0.0)

        # Lane-parallel partial sum (sublane-axis reduce only); the cross-lane
        # reduction is deferred to the wrapper.
        o_ref[...] += jnp.sum(p, axis=0, keepdims=True).reshape(1, 1, _LANES)

    return kernel


# ------------------------------- wrapper -------------------------------------
def adaround_reg_forward(round_mask, it):
    """Returns a scalar jnp.float32, matching adaround_reg.forward(round_mask, iter)."""
    beta_val = float(temp_decay(it))
    if beta_val == 0.0:
        # torch.pow(x, 0) == 1 for all x (incl. 0), so the regularizer is exactly 0.
        return jnp.float32(0.0)

    flat = jnp.ravel(round_mask).astype(jnp.float32)
    n = flat.shape[0]

    rows = _cdiv(n, _LANES)
    padded = rows * _LANES
    if padded != n:
        # Minimal pad (< 128 elems of zeros). Zero pads give h == 0 -> p == 0, so
        # they drop out of the (N - sum_p) finalize exactly.
        # TODO(synk): a manual-DMA ragged tail would avoid this O(n) pad copy.
        flat = jnp.pad(flat, (0, padded - n))
    x2d = flat.reshape(rows, _LANES)

    block_rows = rows if rows <= _MAX_BLOCK_ROWS else _MAX_BLOCK_ROWS
    total_blocks = _cdiv(rows, block_rows)
    n_stripes = _NUM_STRIPES if total_blocks >= _NUM_STRIPES else 1
    steps = _cdiv(total_blocks, n_stripes)

    def x_index_map(s, k, beta_ref):
        blk = s * steps + k
        # Clamp so no fully out-of-bounds block is ever fetched; the kernel masks
        # duplicated blocks by their *logical* position.
        return (jnp.minimum(blk, total_blocks - 1), 0)

    beta = jnp.asarray([beta_val], dtype=jnp.float32)

    partials = pl.pallas_call(
        _make_kernel(block_rows, steps, rows),
        out_shape=jax.ShapeDtypeStruct((n_stripes, 1, _LANES), jnp.float32),
        grid_spec=pltpu.PrefetchScalarGridSpec(
            num_scalar_prefetch=1,
            grid=(n_stripes, steps),
            in_specs=[pl.BlockSpec((block_rows, _LANES), x_index_map)],
            out_specs=pl.BlockSpec((1, 1, _LANES), lambda s, k, beta_ref: (s, 0, 0)),
        ),
        compiler_params=pltpu.CompilerParams(
            dimension_semantics=("parallel", "arbitrary"),
        ),
    )(beta, x2d)

    sum_p = jnp.sum(partials)
    return jnp.float32(ALPHA) * (jnp.float32(n) - sum_p)


# ------------------------------ reference ------------------------------------
def adaround_reg_reference(round_mask, it):
    beta = temp_decay(it)
    x = jnp.asarray(round_mask, dtype=jnp.float32)
    rect = jnp.clip((ZETA - GAMMA) * jax.nn.sigmoid(x) + GAMMA, 0.0, 1.0)
    h = jnp.abs(rect - 0.5) * 2.0
    p = jnp.power(h, jnp.float32(beta))   # matches torch.pow (0**0 == 1, 0**b == 0)
    return jnp.float32(ALPHA) * jnp.sum(1.0 - p)


# -------------------------------- main ----------------------------------------
if __name__ == "__main__":
    key = jax.random.PRNGKey(0)
    shapes = [
        (4, 8, 3, 3),      # tiny conv weight; element count not a multiple of 128
        (80, 64, 8, 8),    # 2560 rows -> 2 blocks, 2 stripes, partial tail block
        (129, 64, 8, 8),   # 4128 rows -> 3 blocks -> exercises clamped duplicate block
    ]

    ok = True
    for i, shape in enumerate(shapes):
        k = jax.random.fold_in(key, i)
        round_mask = jax.random.normal(k, shape, dtype=jnp.float32)
        for it in (100, 5000, 9000):   # covers beta == 0 branch and annealed betas
            got = jax.block_until_ready(adaround_reg_forward(round_mask, it))
            want = jax.block_until_ready(adaround_reg_reference(round_mask, it))
            if not jnp.allclose(got, want, rtol=1e-4, atol=1e-5):
                ok = False
                print(f"MISMATCH shape={shape} iter={it}: got={got}, want={want}")

    if ok:
        print("KERNEL_OK")
</pallas_src>

<mosaic_0001>
module attributes {stable_mosaic.version = 11 : i64} {
  func.func @kernel(%arg0: i32, %arg1: i32, %arg2: memref<1xf32, #tpu.memory_space<smem>>, %arg3: memref<3x128xf32, #tpu.memory_space<vmem>>, %arg4: memref<1x1x128xf32, #tpu.memory_space<vmem>>) attributes {dimension_semantics = [#tpu.dimension_semantics<parallel>, #tpu.dimension_semantics<arbitrary>], iteration_bounds = array<i64: 1, 1>, scalar_prefetch = 1 : i64, scratch_operands = 0 : i64, tpu.core_type = #tpu.core_type<tc>, window_params = [{transform_indices = @transform_0, window_bounds = array<i64: 3, 128>}, {transform_indices = @transform_1, window_bounds = array<i64: 1, 1, 128>}]} {
    %c0_i32 = arith.constant 0 : i32
    %0 = arith.cmpi eq, %arg1, %c0_i32 : i32
    %1 = arith.extui %0 : i1 to i32
    %c0_i32_0 = arith.constant 0 : i32
    %2 = arith.cmpi ne, %1, %c0_i32_0 : i32
    scf.if %2 {
      %cst_17 = arith.constant 0.000000e+00 : f32
      %39 = vector.broadcast %cst_17 : f32 to vector<1x1x128xf32>
      %c0_18 = arith.constant 0 : index
      %c0_19 = arith.constant 0 : index
      %c0_20 = arith.constant 0 : index
      %40 = vector.load %arg4[%c0_18, %c0_19, %c0_20] : memref<1x1x128xf32, #tpu.memory_space<vmem>>, vector<1x1x128xf32>
      tpu.vector_store %arg4[%c0_18, %c0_19, %c0_20], %39 {strides = array<i32>} : memref<1x1x128xf32, #tpu.memory_space<vmem>>, vector<1x1x128xf32>,
    } else {
    }
    %c0 = arith.constant 0 : index
    %3 = memref.load %arg2[%c0] : memref<1xf32, #tpu.memory_space<smem>>
    %c0_1 = arith.constant 0 : index
    %c0_2 = arith.constant 0 : index
    %4 = vector.load %arg3[%c0_1, %c0_2] : memref<3x128xf32, #tpu.memory_space<vmem>>, vector<3x128xf32>
    %cst = arith.constant 5.000000e-01 : f32
    %5 = vector.broadcast %cst : f32 to vector<3x128xf32>
    %6 = arith.mulf %4, %5 : vector<3x128xf32>
    %7 = math.tanh %6 : vector<3x128xf32>
    %8 = math.absf %7 : vector<3x128xf32>
    %cst_3 = arith.constant 1.200000e+00 : f32
    %9 = vector.broadcast %cst_3 : f32 to vector<3x128xf32>
    %10 = arith.mulf %8, %9 : vector<3x128xf32>
    %cst_4 = arith.constant 1.000000e+00 : f32
    %11 = vector.broadcast %cst_4 : f32 to vector<3x128xf32>
    %12 = arith.minimumf %10, %11 : vector<3x128xf32>
    %cst_5 = arith.constant 1.000000e-30 : f32
    %13 = vector.broadcast %cst_5 : f32 to vector<3x128xf32>
    %14 = arith.maximumf %12, %13 : vector<3x128xf32>
    %15 = math.log %14 : vector<3x128xf32>
    %cst_6 = arith.constant 0.000000e+00 : f32
    %16 = vector.broadcast %cst_6 : f32 to vector<3x128xf32>
    %17 = arith.cmpf ogt, %12, %16 : vector<3x128xf32>
    %18 = vector.broadcast %3 : f32 to vector<3x128xf32>
    %19 = arith.mulf %18, %15 : vector<3x128xf32>
    %20 = math.exp %19 : vector<3x128xf32>
    %cst_7 = arith.constant 0.000000e+00 : f32
    %21 = vector.broadcast %cst_7 : f32 to vector<3x128xf32>
    %22 = arith.select %17, %20, %21 : vector<3x128xi1>, vector<3x128xf32>
    %c1_i32 = arith.constant 1 : i32
    %23 = arith.muli %arg0, %c1_i32 : i32
    %24 = arith.addi %23, %arg1 : i32
    %c3_i32 = arith.constant 3 : i32
    %25 = arith.muli %24, %c3_i32 : i32
    %26 = tpu.iota {dimensions = array<i32: 0>} : vector<3x128xi32>
    %27 = vector.broadcast %25 : i32 to vector<3x128xi32>
    %28 = arith.addi %27, %26 : vector<3x128xi32>
    %c3_i32_8 = arith.constant 3 : i32
    %29 = vector.broadcast %c3_i32_8 : i32 to vector<3x128xi32>
    %30 = arith.cmpi slt, %28, %29 : vector<3x128xi32>
    %cst_9 = arith.constant 0.000000e+00 : f32
    %31 = vector.broadcast %cst_9 : f32 to vector<3x128xf32>
    %32 = arith.select %30, %22, %31 : vector<3x128xi1>, vector<3x128xf32>
    %c0_10 = arith.constant 0 : index
    %c0_11 = arith.constant 0 : index
    %c0_12 = arith.constant 0 : index
    %33 = vector.load %arg4[%c0_10, %c0_11, %c0_12] : memref<1x1x128xf32, #tpu.memory_space<vmem>>, vector<1x1x128xf32>
    %cst_13 = arith.constant dense<0.000000e+00> : vector<128xf32>
    %34 = vector.multi_reduction <add>, %32, %cst_13 [0] : vector<3x128xf32> to vector<128xf32>
    %35 = vector.shape_cast %34 : vector<128xf32> to vector<1x128xf32>
    %36 = vector.shape_cast %35 : vector<1x128xf32> to vector<1x1x128xf32>
    %37 = arith.addf %33, %36 : vector<1x1x128xf32>
    %c0_14 = arith.constant 0 : index
    %c0_15 = arith.constant 0 : index
    %c0_16 = arith.constant 0 : index
    %38 = vector.load %arg4[%c0_14, %c0_15, %c0_16] : memref<1x1x128xf32, #tpu.memory_space<vmem>>, vector<1x1x128xf32>
    tpu.vector_store %arg4[%c0_14, %c0_15, %c0_16], %37 {strides = array<i32>} : memref<1x1x128xf32, #tpu.memory_space<vmem>>, vector<1x1x128xf32>,
    return
  }
  func.func @transform_0(%arg0: i32, %arg1: i32, %arg2: memref<1xf32, #tpu.memory_space<smem>>) -> (i32, i32) {
    %c1_i32 = arith.constant 1 : i32
    %0 = arith.muli %arg0, %c1_i32 : i32
    %1 = arith.addi %0, %arg1 : i32
    %c0_i32 = arith.constant 0 : i32
    %2 = arith.minsi %1, %c0_i32 : i32
    %c0_i32_0 = arith.constant 0 : i32
    %c0_i32_1 = arith.constant 0 : i32
    return %2, %c0_i32_0 : i32, i32
  }
  func.func @transform_1(%arg0: i32, %arg1: i32, %arg2: memref<1xf32, #tpu.memory_space<smem>>) -> (i32, i32, i32) {
    %c0_i32 = arith.constant 0 : i32
    %c0_i32_0 = arith.constant 0 : i32
    %c0_i32_1 = arith.constant 0 : i32
    return %arg0, %c0_i32, %c0_i32_0 : i32, i32, i32
  }
}

</mosaic_0001>

<bundles_post_ra>
// kernel: tpu_custom_call.1
= control target key start
LH: loop header
LB: loop body
LE: loop exit
PB: predicated region body
PF: predicated region fallthrough
CT: control target
= control target key end

     0   :  { %8 = vsyncpa [#allocation5], 0  ;;  %s180_s0 = inlined_call_operand.<no memory space> [shape: f32[1], index: 0, kind: input, shape index: {}]   ;;  %s181_s1 = inlined_call_operand.hbm [shape: f32[3,128], index: 1, kind: input, shape index: {}]   ;;  %s182_s2 = inlined_call_operand.hbm [shape: f32[1,1,128], index: 2, kind: output, shape index: {}]  }
   0x1   :  { %9 = vsyncpa [#allocation6], 0  ;;  %s20_s11 = sshll.u32 %s181_s1, 4  ;;  %s153_s12 = smov [#allocation4]   ;;  %s21_s11 = int_to_ptr.hbm [resolvable:$true] %s20_s11 }
   0x2   :  { %s22_s13 = sshll.u32 %s153_s12, 4  ;;  %s23_s13 = int_to_ptr.vmem [resolvable:$true] %s22_s13 }
   0x3   :  { %25 = dma.hbm_to_vmem [thread:$0]  %s21_s11, 64, %s23_s13, [#allocation5]  }
   0x4   :  { %149 = dma.done.wait [#allocation5], 64  }
   0x5   :  { %150 = vsyncadd [#allocation5], 4294967232  ;;  %v154_v0 = vmov 0.0   ;;  %v39_v1 = vld [vmem:[#allocation4] sm:$0x7]  ;;  %v49_v9 = vstv %s180_s0  ;;  %v56_v12 = vlaneseq  ;;  %vm63_vm2 = vcmask 1042432  }
   0x6   :  { %37 = vst [vmem:[#allocation7] sm:$0x1] %v154_v0  ;;  %v40_v2 = vmul.f32 0.5, %v39_v1  ;;  %s155_s0 = smov [#allocation7]   ;;  %s80_s18 = sshll.u32 %s182_s2, 4  ;;  %s81_s18 = int_to_ptr.hbm [resolvable:$true] %s80_s18 }
   0x7   :  { %v57_v14 = vshrl.u32 %v56_v12, 7  ;;  %s78_s15 = sshll.u32 %s155_s0, 4  ;;  %s79_s15 = int_to_ptr.vmem [resolvable:$true] %s78_s15 }
   0x8   :  { %95 = vtanh.f32 %v40_v2 }
   0x9   :  { %vm60_vm1 = vcmp.lt.s32.totalorder %v57_v14, 3 }
   0xd   :  { %v62_v24 = vld [vmem:[#allocation7] sm:$0x1] }
   0xe   :  { %v96_v3 = vpop.eup %95 }
   0xf   :  { %v42_v4 = vand.u32 2147483647, %v96_v3 }
  0x11   :  { %v43_v5 = vmul.f32 1.2, %v42_v4 }
  0x13   :  { %v44_v6 = vmin.f32 %v43_v5, 1.0 }
  0x15   :  { %v45_v7 = vmax.f32 %v44_v6, 1e-30  ;;  %vm48_vm0 = vcmp.gt.f32.partialorder %v44_v6, 0.0 }
  0x17   :  { %97 = vlog2.f32 %v45_v7 }
  0x1d   :  { %v98_v8 = vpop.eup %97 }
  0x1e   :  { %v47_v10 = vmul.f32 0.6931472, %v98_v8 }
  0x20   :  { %v50_v11 = vmul.f32 %v49_v9, %v47_v10 }
  0x22   :  { %v51_v13 = vmul.f32 1.442695, %v50_v11 }
  0x24   :  { %99 = vpow2.f32 %v51_v13 }
  0x2a   :  { %v100_v15 = vpop.eup %99 }
  0x2b   :  { %v53_v16 = vsel %vm48_vm0, %v100_v15, 0.0 }
  0x2c   :  { %v61_v17 = vsel %vm60_vm1, %v53_v16, 0.0 }
  0x2d   :  { %v64_v18 = vsel %vm63_vm2, %v61_v17, 0.0 }
  0x2e   :  { %v65_v19 = vrot.slane %v64_v18, 4 }
  0x30   :  { %v66_v20 = vadd.f32 %v65_v19, %v64_v18 }
  0x32   :  { %v67_v21 = vrot.slane %v66_v20, 2 }
  0x34   :  { %v68_v22 = vadd.f32 %v67_v21, %v66_v20 }
  0x36   :  { %v69_v23 = vrot.slane %v68_v22, 1 }
  0x38   :  { %v70_v25 = vadd.f32 %v69_v23, %v68_v22 }
  0x3a   :  { %v71_v26 = vadd.f32 %v70_v25, %v62_v24 }
  0x3c   :  { %72 = vst [vmem:[#allocation7] sm:$0x1] %v71_v26 }
  0x3d   :  { %83 = dma.vmem_to_hbm [thread:$0]  %s79_s15, 16, %s81_s18, [#allocation6]  }
  0x3e   :  { %151 = dma.done.wait [#allocation6], 16  }
  0x3f   :  { %152 = vsyncadd [#allocation6], 4294967280 }
  0x40   :  { %88 = vsyncpa [#allocation5], 1 }
  0x41   :  { %89 = vsyncpa [#allocation6], 1 }

</bundles_post_ra>
